<compile_context>
chip_gen: v7x
topology: tpu7x:2x2x1
jax: 0.10.0
libtpu: 0.0.40
codegen_flags: <defaults>
</compile_context>

<pallas_src>
import functools

import jax
import jax.numpy as jnp
from jax.experimental import pallas as pl
from jax.experimental.pallas import tpu as pltpu


# --------------------------------------------------------------------------- #
# Fused single-pass kernel (small slabs only)
# --------------------------------------------------------------------------- #
def _ca_fused_kernel(w_ref, x_ref, o_ref):
    # w_ref : SMEM (3,) float32 -- conv1d taps [w0, w1, w2]
    # x_ref : VMEM (1, C, HW)   -- input dtype
    # o_ref : VMEM (1, C, HW)
    x = x_ref[0]                                   # (C, HW)
    hw = x.shape[1]

    # Global average pool with f32 accumulation; 1/HW is a trace-time constant.
    m = jnp.sum(x.astype(jnp.float32), axis=1, keepdims=True) * (1.0 / hw)  # (C,1)

    # 3-tap conv along the channel axis (sublanes), zero-padded at the ends.
    zero = jnp.zeros((1, 1), jnp.float32)
    left = jnp.concatenate([zero, m[:-1, :]], axis=0)     # m[c-1]
    right = jnp.concatenate([m[1:, :], zero], axis=0)     # m[c+1]
    att = jax.nn.sigmoid(w_ref[0] * left + w_ref[1] * m + w_ref[2] * right)

    # Scale in the input dtype (no full-slab f32 copy of x).
    o_ref[0] = x * att.astype(x.dtype)


def _fused_forward(x_flat, conv_weight):
    n, c, hw = x_flat.shape
    nbytes = x_flat.dtype.itemsize
    cost = pl.CostEstimate(
        flops=2 * n * c * hw,
        transcendentals=n * c,
        bytes_accessed=2 * n * c * hw * nbytes,
    )
    return pl.pallas_call(
        _ca_fused_kernel,
        out_shape=jax.ShapeDtypeStruct((n, c, hw), x_flat.dtype),
        grid=(n,),
        in_specs=[
            pl.BlockSpec(memory_space=pltpu.MemorySpace.SMEM),   # conv taps
            pl.BlockSpec((1, c, hw), lambda b: (b, 0, 0)),       # full slab / batch
        ],
        out_specs=pl.BlockSpec((1, c, hw), lambda b: (b, 0, 0)),
        compiler_params=pltpu.CompilerParams(dimension_semantics=("parallel",)),
        cost_estimate=cost,
    )(conv_weight.astype(jnp.float32), x_flat)


# --------------------------------------------------------------------------- #
# Tiled two-kernel path (production shapes)
# --------------------------------------------------------------------------- #
def _ca_pool_kernel(x_ref, sum_ref, *, hw, t_hw, ragged):
    # Accumulate per-channel spatial sums across HW tiles (f32 accumulation).
    @pl.when(pl.program_id(1) == 0)
    def _():
        sum_ref[...] = jnp.zeros_like(sum_ref)

    x = x_ref[0].astype(jnp.float32)               # (C, T_hw)
    if ragged:
        # Last tile extends past HW; the out-of-range lanes of the VMEM block
        # hold stale data, so mask them out of the reduction.
        start = pl.program_id(1) * t_hw
        lane = jax.lax.broadcasted_iota(jnp.int32, x.shape, 1)
        x = jnp.where(start + lane < hw, x, 0.0)
    sum_ref[0] += jnp.sum(x, axis=1, keepdims=True)


def _ca_scale_kernel(att_ref, x_ref, o_ref):
    # Pure streaming scale: one load, one multiply, one store per vreg.
    # Out-of-range lanes of a ragged last tile are dropped by the writeback DMA.
    x = x_ref[0]                                   # (C, T_hw), input dtype
    o_ref[0] = x * att_ref[0].astype(x.dtype)      # att (C, 1) broadcast over lanes


def _choose_spatial_tile(c, hw, itemsize, target_tile_bytes):
    """Pick a lane-dense (multiple-of-128) HW tile of ~target_tile_bytes."""
    if hw <= 128:
        return hw, 1, False                        # block == full dims, always legal
    max_t = max(128, (target_tile_bytes // max(1, c * itemsize)) // 128 * 128)
    t_hw = min(max_t, (hw // 128) * 128)           # multiple of 128, <= hw
    num_t = pl.cdiv(hw, t_hw)
    return t_hw, num_t, (hw % t_hw) != 0


def _tiled_forward(x_flat, conv_weight, target_tile_bytes):
    n, c, hw = x_flat.shape
    nbytes = x_flat.dtype.itemsize
    t_hw, num_t, ragged = _choose_spatial_tile(c, hw, nbytes, target_tile_bytes)

    # ---- pass 1: per-channel spatial sums (f32) ---------------------------- #
    pool_cost = pl.CostEstimate(
        flops=n * c * hw,
        transcendentals=0,
        bytes_accessed=n * c * hw * nbytes + n * c * 4,
    )
    sums = pl.pallas_call(
        functools.partial(_ca_pool_kernel, hw=hw, t_hw=t_hw, ragged=ragged),
        out_shape=jax.ShapeDtypeStruct((n, c, 1), jnp.float32),
        grid=(n, num_t),
        in_specs=[pl.BlockSpec((1, c, t_hw), lambda b, t: (b, 0, t))],
        out_specs=pl.BlockSpec((1, c, 1), lambda b, t: (b, 0, 0)),
        compiler_params=pltpu.CompilerParams(
            dimension_semantics=("parallel", "arbitrary")),
        cost_estimate=pool_cost,
    )(x_flat)

    # ---- tiny attention vector: 3-tap conv + sigmoid (plain JAX, N*C) ------ #
    w = conv_weight.astype(jnp.float32)
    mean = sums[:, :, 0] * (1.0 / hw)                         # (N, C)
    m_pad = jnp.pad(mean, ((0, 0), (1, 1)))                   # zero-pad channel ends
    att = jax.nn.sigmoid(w[0] * m_pad[:, :-2]
                         + w[1] * m_pad[:, 1:-1]
                         + w[2] * m_pad[:, 2:])[:, :, None]   # (N, C, 1) f32

    # ---- pass 2: streaming per-channel scale ------------------------------- #
    scale_cost = pl.CostEstimate(
        flops=n * c * hw,
        transcendentals=0,
        bytes_accessed=2 * n * c * hw * nbytes + n * c * 4,
    )
    return pl.pallas_call(
        _ca_scale_kernel,
        out_shape=jax.ShapeDtypeStruct((n, c, hw), x_flat.dtype),
        grid=(n, num_t),
        in_specs=[
            pl.BlockSpec((1, c, 1), lambda b, t: (b, 0, 0)),      # attention
            pl.BlockSpec((1, c, t_hw), lambda b, t: (b, 0, t)),   # x tile
        ],
        out_specs=pl.BlockSpec((1, c, t_hw), lambda b, t: (b, 0, t)),
        compiler_params=pltpu.CompilerParams(
            dimension_semantics=("parallel", "parallel")),
        cost_estimate=scale_cost,
    )(att, x_flat)


# --------------------------------------------------------------------------- #
# Public wrapper
# --------------------------------------------------------------------------- #
def ca_forward(x, conv_weight, *,
               fused_slab_bytes_limit=2 * 1024 * 1024,
               target_tile_bytes=2 * 1024 * 1024):
    """x: (N, C, H, W); conv_weight: Conv1d(1,1,3,bias=False) taps, any shape with 3 elems."""
    n, c, h, w = x.shape
    hw = h * w
    x_flat = x.reshape(n, c, hw)
    conv_weight = conv_weight.reshape(-1)
    slab_bytes = c * hw * x.dtype.itemsize
    # Single-pass form only when the whole (C, HW) slab is small enough that
    # double-buffered in+out stays well inside scoped VMEM on every chip
    # (v5e/v6e default 16/32 MiB scoped; v7x has only 64 MiB physical VMEM).
    if slab_bytes <= fused_slab_bytes_limit:
        out_flat = _fused_forward(x_flat, conv_weight)
    else:
        out_flat = _tiled_forward(x_flat, conv_weight, target_tile_bytes)
    return out_flat.reshape(n, c, h, w)


def ca_reference(x, conv_weight):
    """Pure-JAX reference mirroring the PyTorch module."""
    conv_weight = conv_weight.reshape(-1)
    m = jnp.mean(x.astype(jnp.float32), axis=(2, 3))          # (N, C)
    m_pad = jnp.pad(m, ((0, 0), (1, 1)))                      # zero-pad channels
    w = conv_weight.astype(jnp.float32)
    conv = w[0] * m_pad[:, :-2] + w[1] * m_pad[:, 1:-1] + w[2] * m_pad[:, 2:]
    att = jax.nn.sigmoid(conv)[:, :, None, None]              # (N, C, 1, 1)
    return (x * att.astype(x.dtype)).astype(x.dtype)


if __name__ == "__main__":
    key = jax.random.PRNGKey(0)
    kx1, kx2, kw = jax.random.split(key, 3)

    # Deterministic init for the Conv1d(1, 1, 3, bias=False) weight.
    conv_weight = jax.random.normal(kw, (3,), dtype=jnp.float32) * 0.5

    # 1) Small shape -> fused single-pass path.
    x1 = jax.random.normal(kx1, (2, 8, 16, 16), dtype=jnp.float32)
    out1 = jax.block_until_ready(ca_forward(x1, conv_weight))
    ref1 = ca_reference(x1, conv_weight)
    assert out1.shape == x1.shape
    assert jnp.allclose(out1, ref1, atol=1e-5, rtol=1e-5)

    # 2) Non-128-multiple spatial extent -> tiled two-kernel path exercising
    #    the ragged last tile (masked pooling, dropped OOB writeback) and a
    #    multi-tile reduction (small target tile forces several HW tiles).
    x2 = jax.random.normal(kx2, (2, 32, 56, 56), dtype=jnp.float32)
    out2 = jax.block_until_ready(
        ca_forward(x2, conv_weight,
                   fused_slab_bytes_limit=0,          # force tiled path
                   target_tile_bytes=64 * 1024))
    ref2 = ca_reference(x2, conv_weight)
    assert out2.shape == x2.shape
    assert jnp.allclose(out2, ref2, atol=1e-4, rtol=1e-4)

    print("KERNEL_OK")
</pallas_src>

<mosaic_0001>
module attributes {stable_mosaic.version = 11 : i64} {
  func.func @_ca_fused_kernel(%arg0: i32, %arg1: memref<3xf32, #tpu.memory_space<smem>>, %arg2: memref<1x8x256xf32, #tpu.memory_space<vmem>>, %arg3: memref<1x8x256xf32, #tpu.memory_space<vmem>>) attributes {dimension_semantics = [#tpu.dimension_semantics<parallel>], iteration_bounds = array<i64: 2>, scalar_prefetch = 0 : i64, scratch_operands = 0 : i64, tpu.core_type = #tpu.core_type<tc>, window_params = [{transform_indices = @transform_0, window_bounds = array<i64: 3>}, {transform_indices = @transform_1, window_bounds = array<i64: 1, 8, 256>}, {transform_indices = @transform_2, window_bounds = array<i64: 1, 8, 256>}]} {
    %c0 = arith.constant 0 : index
    %c0_0 = arith.constant 0 : index
    %c0_1 = arith.constant 0 : index
    %0 = vector.load %arg2[%c0, %c0_0, %c0_1] : memref<1x8x256xf32, #tpu.memory_space<vmem>>, vector<1x8x256xf32>
    %1 = vector.shape_cast %0 : vector<1x8x256xf32> to vector<8x256xf32>
    %cst = arith.constant dense<0.000000e+00> : vector<8xf32>
    %2 = vector.multi_reduction <add>, %1, %cst [1] : vector<8x256xf32> to vector<8xf32>
    %3 = vector.shape_cast %2 : vector<8xf32> to vector<8x1xf32>
    %cst_2 = arith.constant 3.906250e-03 : f32
    %4 = vector.broadcast %cst_2 : f32 to vector<8x1xf32>
    %5 = arith.mulf %3, %4 : vector<8x1xf32>
    %cst_3 = arith.constant 0.000000e+00 : f32
    %6 = vector.broadcast %cst_3 : f32 to vector<1x1xf32>
    %7 = vector.extract_strided_slice %5 {offsets = [0, 0], sizes = [7, 1], strides = [1, 1]} : vector<8x1xf32> to vector<7x1xf32>
    %8 = tpu.concatenate %6, %7 in 0 : vector<1x1xf32>, vector<7x1xf32> -> vector<8x1xf32>
    %9 = vector.extract_strided_slice %5 {offsets = [1, 0], sizes = [7, 1], strides = [1, 1]} : vector<8x1xf32> to vector<7x1xf32>
    %10 = tpu.concatenate %9, %6 in 0 : vector<7x1xf32>, vector<1x1xf32> -> vector<8x1xf32>
    %c0_4 = arith.constant 0 : index
    %11 = memref.load %arg1[%c0_4] : memref<3xf32, #tpu.memory_space<smem>>
    %12 = vector.broadcast %11 : f32 to vector<8x1xf32>
    %13 = arith.mulf %12, %8 : vector<8x1xf32>
    %c1 = arith.constant 1 : index
    %14 = memref.load %arg1[%c1] : memref<3xf32, #tpu.memory_space<smem>>
    %15 = vector.broadcast %14 : f32 to vector<8x1xf32>
    %16 = arith.mulf %15, %5 : vector<8x1xf32>
    %17 = arith.addf %13, %16 : vector<8x1xf32>
    %c2 = arith.constant 2 : index
    %18 = memref.load %arg1[%c2] : memref<3xf32, #tpu.memory_space<smem>>
    %19 = vector.broadcast %18 : f32 to vector<8x1xf32>
    %20 = arith.mulf %19, %10 : vector<8x1xf32>
    %21 = arith.addf %17, %20 : vector<8x1xf32>
    %22 = arith.negf %21 : vector<8x1xf32>
    %23 = math.exp %22 : vector<8x1xf32>
    %cst_5 = arith.constant 1.000000e+00 : f32
    %24 = vector.broadcast %cst_5 : f32 to vector<8x1xf32>
    %25 = arith.addf %24, %23 : vector<8x1xf32>
    %26 = arith.divf %24, %25 : vector<8x1xf32>
    %27 = vector.broadcast %26 : vector<8x1xf32> to vector<8x256xf32>
    %28 = arith.mulf %1, %27 : vector<8x256xf32>
    %c0_6 = arith.constant 0 : index
    %c0_7 = arith.constant 0 : index
    %c0_8 = arith.constant 0 : index
    %29 = vector.load %arg3[%c0_6, %c0_7, %c0_8] : memref<1x8x256xf32, #tpu.memory_space<vmem>>, vector<1x8x256xf32>
    %30 = vector.shape_cast %29 : vector<1x8x256xf32> to vector<8x256xf32>
    %31 = vector.shape_cast %28 : vector<8x256xf32> to vector<1x8x256xf32>
    tpu.vector_store %arg3[%c0_6, %c0_7, %c0_8], %31 {strides = array<i32>} : memref<1x8x256xf32, #tpu.memory_space<vmem>>, vector<1x8x256xf32>,
    return
  }
  func.func @transform_0(%arg0: i32) -> i32 {
    %c0_i32 = arith.constant 0 : i32
    %c0_i32_0 = arith.constant 0 : i32
    return %c0_i32 : i32
  }
  func.func @transform_1(%arg0: i32) -> (i32, i32, i32) {
    %c0_i32 = arith.constant 0 : i32
    %c0_i32_0 = arith.constant 0 : i32
    %c0_i32_1 = arith.constant 0 : i32
    return %arg0, %c0_i32, %c0_i32_0 : i32, i32, i32
  }
  func.func @transform_2(%arg0: i32) -> (i32, i32, i32) {
    %c0_i32 = arith.constant 0 : i32
    %c0_i32_0 = arith.constant 0 : i32
    %c0_i32_1 = arith.constant 0 : i32
    return %arg0, %c0_i32, %c0_i32_0 : i32, i32, i32
  }
}

</mosaic_0001>

<bundles_post_ra>
// kernel: tpu_custom_call.1
= control target key start
LH: loop header
LB: loop body
LE: loop exit
PB: predicated region body
PF: predicated region fallthrough
CT: control target
= control target key end

     0   :  { %7 = vsyncpa [#allocation5], 0  ;;  %s737_s0 = inlined_call_operand.hbm [shape: f32[3], index: 0, kind: input, shape index: {}]   ;;  %s738_s1 = inlined_call_operand.hbm [shape: f32[2,8,256], index: 1, kind: input, shape index: {}]   ;;  %s739_s2 = inlined_call_operand.hbm [shape: f32[2,8,256], index: 2, kind: output, shape index: {}]  }
   0x1   :  { %8 = vsyncpa [#allocation3], 0 }
   0x2   :  { %10 = vsyncpa [#allocation3 + $0x1], 0 }
   0x3   :  { %11 = vsyncpa [#allocation4], 0 }
   0x4   :  { %13 = vsyncpa [#allocation4 + $0x1], 0  ;;  %s528_s9 = smov 0   ;;  %s530_s10 = smov 0  }
   0x5   :  { %s532_s11 = smov 0   ;;  %s534_s12 = smov 0  }
   0x6 LB: > { %s549_s13 = sadd.s32 4294967295, %s507_s12   ;;  %s310_s14 = sadd.s32 4294967294, %s507_s12   ;;  %s507_s12 = sphi %s534_s12, %s760_s12   ;;  %s503_s11 = sphi %s532_s11, %s759_s11   ;;  %s499_s10 = sphi %s530_s10, %s758_s10   ;;  %s495_s9 = sphi %s528_s9, %s757_s9  }
   0x7   : > { %p60_p0 = scmp.ne.s32.totalorder %s499_s10, %s495_s9  ;;  %p740_p1 = scmp.eq.s32.totalorder %s549_s13, 0 }
   0x8   : > { %p90_p3 = scmp.eq.s32.totalorder %s310_s14, 1  ;;  %p311_p5 = scmp.ge.s32.totalorder %s507_s12, 1 }
   0x9   : > { %p558_p4 = por %p740_p1, %p60_p0  ;;  %p97_p7 = scmp.lt.s32.totalorder %s507_s12, 3 }
   0xa   : > { %p563_p6 = por %p90_p3, %p60_p0  ;;  %s574_s18 = sadd.s32 1, %s507_s12  }
   0xb   : > { %s743_s15 = scalar_select %p558_p4, 1, 0 }
   0xc   : > { %s744_s16 = scalar_select %p563_p6, 1, 0 }
   0xd   : > { %p568_p8 = pnand %p311_p5, %p97_p7  ;;  %s44_s19 = ssub.s32 %s507_s12, %s574_s18 }
   0xe   : > { %s47_s20 = sadd.s32 1, %s503_s11  ;;  %p587_p12 = scmp.eq.s32.totalorder %s44_s19, 0 }
   0xf   : > { %p339_p10 = pneg %p568_p8  ;;  %p54_p13 = scmp.ne.s32.totalorder %s503_s11, %s499_s10 }
  0x10   : > { %p55_p0 = scmp.eq.s32.totalorder %s507_s12, 0  ;;  %p352_p3 = scmp.lt.s32.totalorder %s507_s12, 2 }
  0x11   : > { %p583_p11 = pnand %p339_p10, %p740_p1  ;;  %s394_s25 = scalar_lea.hbm %s737_s0, 16 }
  0x12   : > { %p395_p5 = scmp.ne.s32.totalorder %s737_s0, %s394_s25  ;;  %p401_p1 = scmp.lt.u32.totalorder %s394_s25, %s737_s0 }
  0x13   : > { %p396_p7 = pneg %p583_p11 }
  0x15   : > { %p397_p10 = pnand %p396_p7, %p395_p5 }
  0x17   : > { %p398_p9 = pneg %p397_p10 }
  0x19   : > { %p403_p2 = pnand %p401_p1, %p398_p9 }
  0x1b   : > { %406 = shalt.err (!%p403_p2)
}
  0x1c   : > { %s509_s30 = smov [#allocation2]   ;;  %p56_p1 = por %p55_p0, %p54_p13 }
  0x1d   : > { %342 = dma.hbm_to_smem (!%p583_p11), %s737_s0, 16, %s509_s30, [#allocation5]  }
  0x1e   : > { %s614_s5 = scalar_select %p587_p12, %s503_s11, %s47_s20  }
  0x1f   : > { %p748_p2 = scmp.eq.s32.totalorder %s549_s13, 1  ;;  %s119_s7 = sand.u32 1, %s503_s11  }
  0x20   : > { %s329_s8 = sshll.u32 %s507_s12, 8  ;;  %s314_s14 = sshll.u32 %s119_s7, 4 }
  0x21   : > { %p626_p9 = por %p748_p2, %p54_p13  ;;  %s635_s23 = scalar_lea.hbm %s738_s1, %s329_s8 }
  0x22   : > { %s123_s20 = scalar_lea.vmem [#allocation6], %s314_s14  ;;  %p639_p11 = pnand %p352_p3, %p56_p1 }
  0x23   : > { %s749_s6 = scalar_select %p626_p9, 1, 0 }
  0x24   : > { %s131_s22 = sshll.u32 %s123_s20, 4  ;;  %s120_s25 = scalar_lea.sflag [#allocation3], %s119_s7  ;;  %s643_s22 = int_to_ptr.vmem [resolvable:$true] %s131_s22 }
  0x25   : > { %s407_s26 = scalar_lea.hbm %s635_s23, 256  ;;  %p409_p13 = pneg %p639_p11 }
  0x26   : > { %p408_p12 = scmp.ne.s32.totalorder %s635_s23, %s407_s26  ;;  %s412_s29 = scalar_lea.hbm %s738_s1, 512 }
  0x27   : > { %p413_p3 = scmp.lt.u32.totalorder %s635_s23, %s738_s1  ;;  %p414_p7 = scmp.lt.u32.totalorder %s412_s29, %s407_s26 }
  0x28   : > { %p410_p0 = pnand %p409_p13, %p408_p12  ;;  %p416_p1 = scmp.lt.u32.totalorder %s407_s26, %s635_s23 }
  0x29   : > { %p415_p10 = por %p414_p7, %p413_p3 }
  0x2a   : > { %p411_p5 = pneg %p410_p0 }
  0x2b   : > { %p417_p2 = por %p416_p1, %p415_p10 }
  0x2d   : > { %p418_p6 = pnand %p417_p2, %p411_p5 }
  0x2f   : > { %421 = shalt.err (!%p418_p6)
}
  0x30   : > { %s422_s4 = scalar_lea.vmem %s643_s22, 256  ;;  %s510_s7 = smov [#allocation6]  }
  0x31   : > { %p423_p12 = scmp.ne.s32.totalorder %s643_s22, %s422_s4  ;;  %s427_s8 = sshll.u32 %s510_s7, 4  ;;  %s428_s8 = int_to_ptr.vmem [resolvable:$false] %s427_s8 }
  0x32   : > { %s429_s14 = scalar_lea.vmem %s428_s8, 512  ;;  %p430_p4 = scmp.lt.s32.totalorder %s643_s22, %s428_s8 }
  0x33   : > { %p425_p0 = pnand %p423_p12, %p409_p13  ;;  %p431_p3 = scmp.lt.s32.totalorder %s429_s14, %s422_s4 }
  0x35   : > { %p426_p9 = pneg %p425_p0  ;;  %p432_p7 = por %p431_p3, %p430_p4 }
  0x37   : > { %p433_p10 = pnand %p432_p7, %p426_p9 }
  0x39   : > { %436 = shalt.err (!%p433_p10)
}
  0x3a   : > { %346 = dma.hbm_to_vmem [thread:$0]  (!%p639_p11), %s635_s23, 256, %s643_s22, %s120_s25  }
  0x3b   : > { %140 = sbr.rel (%p568_p8) target bundleno = 399 (0x18f), region = 28  ;;  %p751_p6 = scmp.eq.s32.totalorder (!%p568_p8), %s549_s13, 0 }
  0x42   : > { %482 = dma.done.wait (%p751_p6), [#allocation5], 16   ;;  %p752_p13 = pmov %p751_p6 }
  0x43   : > { %s677_s19 = sand.u32 1, %s499_s10   ;;  %p753_p4 = scmp.ne.s32.totalorder %s743_s15, 0 }
  0x44   : > { %484 = vsyncadd (%p752_p13), [#allocation5], 4294967280  ;;  %s319_s21 = sshll.u32 %s677_s19, 4  ;;  %s147_s20 = scalar_lea.sflag [#allocation3], %s677_s19 }
  0x45   : > { %s150_s23 = scalar_lea.vmem [#allocation6], %s319_s21 }
  0x46   : > { %486 = dma.done.wait (%p753_p4), %s147_s20, 256  }
  0x47   : > { %488 = vsyncadd (%p753_p4), %s147_s20, 4294967040 }
  0x48   : > { %155 = sfence }
  0x49   : > { %v172_v0 = vld [vmem:[%s150_s23] sm:$0xff]  ;;  %v173_v1 = vld [vmem:[%s150_s23 + $0x8] sm:$0xff]  ;;  %v511_v3 = vmov 0   ;;  %s187_s17 = sld [smem:[#allocation2]]  ;;  %s321_s22 = sld [smem:[#allocation2 + $0x1]]  ;;  %vm181_vm0 = vcmask 1040384  }
  0x4a   : > { %v174_v2 = vadd.f32 %v173_v1, %v172_v0  ;;  %389 = vset.pattern.permute.xlu0 %v511_v3  ;;  %s322_s24 = sld [smem:[#allocation2 + $0x2]]  ;;  %vm185_vm1 = vcmask 1046528   ;;  %s330_s15 = sshll.u32 %s549_s13, 8 }
  0x4b   : > { %s171_s25 = scalar_lea.vmem [#allocation7], %s319_s21  ;;  %s693_s29 = scalar_lea.hbm %s739_s2, %s330_s15 }
  0x4c   : > { %175 = vadd.xlane.f32.xlu0 %v174_v2  ;;  %s228_s26 = sshll.u32 %s171_s25, 4  ;;  %s214_s30 = scalar_lea.sflag [#allocation4], %s677_s19  ;;  %s695_s26 = int_to_ptr.vmem [resolvable:$true] %s228_s26 }
  0x4d   : > { %s437_s13 = scalar_lea.vmem %s695_s26, 256  ;;  %p754_p9 = scmp.ne.s32.totalorder %s749_s6, 0 }
  0x4e   : > { %p438_p8 = scmp.ne.s32.totalorder %s695_s26, %s437_s13  ;;  %s512_s3 = smov [#allocation7]  }
  0x4f   : > { %v188_v6 = vstv %s187_s17  ;;  %v191_v7 = vstv %s321_s22  ;;  %s441_s4 = sshll.u32 %s512_s3, 4  ;;  %s442_s4 = int_to_ptr.vmem [resolvable:$false] %s441_s4 }
  0x50   : > { %v195_v10 = vstv %s322_s24  ;;  %p439_p11 = pnand %p438_p8, %p754_p9  ;;  %s443_s7 = scalar_lea.vmem %s442_s4, 512 }
  0x51   : > { %p444_p1 = scmp.lt.s32.totalorder %s695_s26, %s442_s4  ;;  %p445_p2 = scmp.lt.s32.totalorder %s443_s7, %s437_s13 }
  0x52   : > { %p440_p5 = pneg %p439_p11 }
  0x53   : > { %p446_p12 = por %p445_p2, %p444_p1 }
  0x55   : > { %p447_p0 = pnand %p446_p12, %p440_p5 }
  0xd9   : > { %v176_v4 = vpop.xlane.xlu0 %175 }
  0xda   : > { %v177_v5 = vmul.f32 0.00390625, %v176_v4 }
  0xdc   : > { %v179_v8 = vrot.slane %v177_v5, 7  ;;  %v183_v9 = vrot.slane %v177_v5, 1  ;;  %v192_v14 = vmul.f32 %v191_v7, %v177_v5 }
  0xde   : > { %v182_v11 = vsel %vm181_vm0, 0.0, %v179_v8  ;;  %v186_v12 = vsel %vm185_vm1, %v183_v9, 0.0 }
  0xdf   : > { %v189_v13 = vmul.f32 %v188_v6, %v182_v11  ;;  %v196_v16 = vmul.f32 %v195_v10, %v186_v12 }
  0xe1   : > { %v193_v15 = vadd.f32 %v192_v14, %v189_v13 }
  0xe3   : > { %v197_v17 = vadd.f32 %v196_v16, %v193_v15 }
  0xe5   : > { %v323_v18 = vmul.f32 -1.442695, %v197_v17 }
  0xe7   : > { %390 = vpow2.f32 %v323_v18 }
  0xf1   : > { %v391_v19 = vpop.eup %390 }
  0xf2   : > { %v201_v20 = vadd.f32 1.0, %v391_v19 }
  0xf4   : > { %392 = vrcp.f32 %v201_v20 }
  0xfe   : > { %v393_v21 = vpop.eup %392 }
  0xff   : > { %206 = vperm.xlu0 %389, %v393_v21  }
 0x17e   : > { %v207_v22 = vpop.permute.xlu0 %206 }
 0x17f   : > { %v209_v23 = vmul.f32 %v207_v22, %v172_v0  ;;  %v210_v24 = vmul.f32 %v207_v22, %v173_v1 }
 0x181   : > { %211 = vst [vmem:[%s171_s25] sm:$0xff] %v209_v23  ;;  %212 = vst [vmem:[%s171_s25 + $0x8] sm:$0xff] %v210_v24 }
 0x182   : > { %450 = shalt.err (!%p447_p0)
}
 0x183   : > { %s451_s8 = scalar_lea.hbm %s693_s29, 256  ;;  %s455_s21 = scalar_lea.hbm %s739_s2, 512 }
 0x184   : > { %p452_p3 = scmp.ne.s32.totalorder %s693_s29, %s451_s8  ;;  %p456_p6 = scmp.lt.u32.totalorder %s693_s29, %s739_s2 }
 0x185   : > { %p457_p13 = scmp.lt.u32.totalorder %s455_s21, %s451_s8  ;;  %p459_p8 = scmp.lt.u32.totalorder %s451_s8, %s693_s29 }
 0x186   : > { %p453_p7 = pnand %p452_p3, %p754_p9 }
 0x187   : > { %p458_p4 = por %p457_p13, %p456_p6 }
 0x188   : > { %p454_p10 = pneg %p453_p7 }
 0x189   : > { %p460_p11 = por %p459_p8, %p458_p4 }
 0x18b   : > { %p461_p5 = pnand %p460_p11, %p454_p10 }
 0x18d   : > { %464 = shalt.err (!%p461_p5)
}
 0x18e   : > { %337 = dma.vmem_to_hbm [thread:$0]  (%p754_p9), %s695_s26, 256, %s693_s29, %s214_s30  }
 0x18f PF: > { %s240_s17 = sand.u32 1, %s495_s9   ;;  %p755_p1 = scmp.ne.s32.totalorder %s744_s16, 0 }
 0x190   : > { %p756_p2 = scmp.ge.s32.totalorder %s507_s12, 2  ;;  %s241_s22 = scalar_lea.sflag [#allocation4], %s240_s17 }
 0x192   : > { %p348_p12 = pnand %p756_p2, %p755_p1 }
 0x194   : > { %490 = dma.done.wait (!%p348_p12), %s241_s22, 256  }
 0x195   : > { %492 = vsyncadd (!%p348_p12), %s241_s22, 4294967040  ;;  %p16_p0 = scmp.ge.s32.totalorder %s574_s18, 4   ;;  %s757_s9 = smov %s499_s10 }
 0x196   : > { %s758_s10 = smov %s503_s11  ;;  %s759_s11 = smov %s614_s5 }
 0x197   : > { %s760_s12 = smov %s574_s18  ;;  %18 = sbr.rel (!%p16_p0) target bundleno = 6 (0x6), region = 78 }
 0x19e   :  { %246 = vsyncpa [#allocation3], 1 }
 0x19f   :  { %248 = vsyncpa [#allocation3 + $0x1], 1 }
 0x1a0   :  { %249 = vsyncpa [#allocation4], 1 }
 0x1a1   :  { %251 = vsyncpa [#allocation4 + $0x1], 1 }
 0x1a2   :  { %252 = vsyncpa [#allocation5], 1 }
 0x1a3   :  { %254 = vsyncpa [#allocation5 + $0x1], 1 }

</bundles_post_ra>
